<compile_context>
chip_gen: v7x
topology: tpu7x:2x2x1
jax: 0.10.0
libtpu: 0.0.40
codegen_flags: <defaults>
</compile_context>

<pallas_src>
import jax
import jax.numpy as jnp
from jax.experimental import pallas as pl
from jax.experimental.pallas import tpu as pltpu

# ----- packed-parameter layout (flat f32 vector, read as SMEM scalars) -----
H1, H2 = 10, 5
W1_OFF = 0                  # w1[0, j]            j in [0, 10)
B1_OFF = W1_OFF + H1        # b1[j]
W2_OFF = B1_OFF + H1        # w2[j, k] at j*5 + k
B2_OFF = W2_OFF + H1 * H2   # b2[k]
W3_OFF = B2_OFF + H2        # w3[k, 0]
B3_OFF = W3_OFF + H2        # b3[0]
N_PARAMS = B3_OFF + 1       # 81


def mlp_kernel(x_ref, p_ref, o_ref):
    # x_ref/o_ref: (tile_rows, cols) f32 VMEM tiles (batch on sublane AND lane).
    # p_ref: (81,) f32 in SMEM — read as scalars, broadcast on the VPU.
    x = x_ref[...]

    # Layer-1 (+ReLU) fused into layer-2 accumulation: compute h1_j, fold it
    # into the 5 layer-2 accumulators, drop it.  Live full-tile arrays at any
    # point: x + 5 accumulators + 1 transient (+ out) ~ 7-8, well under 64 vregs
    # worth per (8,128) slice -> no spill traffic.
    acc = [None] * H2
    for j in range(H1):
        h1j = jnp.maximum(x * p_ref[W1_OFF + j] + p_ref[B1_OFF + j], 0.0)
        for k in range(H2):
            term = h1j * p_ref[W2_OFF + j * H2 + k]
            acc[k] = term if acc[k] is None else acc[k] + term

    # Layer-2 bias + ReLU, fused into the layer-3 5-term MAC.
    out = None
    for k in range(H2):
        h2k = jnp.maximum(acc[k] + p_ref[B2_OFF + k], 0.0)
        term = h2k * p_ref[W3_OFF + k]
        out = term if out is None else out + term

    o_ref[...] = out + p_ref[B3_OFF]


def _round_up(a, b):
    return ((a + b - 1) // b) * b


def _plan_tiles(rows_needed, max_tile_rows):
    """Pick (tile_rows, padded_rows) for the lane-dense (rows, 128) layout.

    Cost model (row-equivalents): padded compute = padded_rows, plus ~600-cycle
    grid-step overhead ~= 32 rows of VPU work per step.  Also cap the tile so
    the grid has >= 2 steps when rows allow (v7x dual-TensorCore sharding).
    """
    rows8 = _round_up(max(rows_needed, 1), 8)
    cap = min(max_tile_rows, rows8)
    if rows8 >= 16:
        cap = min(cap, _round_up(rows8 // 2, 8))  # ensure >= 2 grid steps
    cap = max(cap, 8)

    STEP_OVERHEAD_ROWS = 32
    best_key, best = None, None
    t = cap
    while t >= 8:
        padded = _round_up(rows8, t)
        steps = padded // t
        key = (padded + STEP_OVERHEAD_ROWS * steps, -t)
        if best_key is None or key < best_key:
            best_key, best = key, (t, padded)
        t -= 8
    return best


def _pallas_mlp_2d(x2d, packed_params, tile_rows):
    rows, cols = x2d.shape
    grid = (rows // tile_rows,)
    return pl.pallas_call(
        mlp_kernel,
        out_shape=jax.ShapeDtypeStruct((rows, cols), jnp.float32),
        grid_spec=pltpu.PrefetchScalarGridSpec(
            num_scalar_prefetch=0,
            grid=grid,
            in_specs=[
                pl.BlockSpec((tile_rows, cols), lambda i: (i, 0)),       # x tile
                pl.BlockSpec(memory_space=pltpu.MemorySpace.SMEM),       # params
            ],
            out_specs=pl.BlockSpec((tile_rows, cols), lambda i: (i, 0)),
        ),
        compiler_params=pltpu.CompilerParams(
            dimension_semantics=("parallel",)),
    )(x2d, packed_params)


def mlp_forward(x, packed_params, *, max_tile_rows=2048):
    """x: (N, 1) f32. Returns (N, 1) f32 matching Net.forward."""
    n = x.shape[0]

    # Fast path (covers the N=1000 case): N a multiple of 8 and small enough
    # for one tile -> reshape only (same flat order, no pad / no slice) and run
    # a single full-array block.
    if n % 8 == 0 and 8 <= n <= 8 * 2048:
        cols = n // 8
        out2d = _pallas_mlp_2d(x.reshape(8, cols), packed_params, tile_rows=8)
        return out2d.reshape(n, 1)

    # General path: lane-dense (rows, 128) layout with padding-aware tiling.
    tile_rows, rows = _plan_tiles(-(-n // 128), max_tile_rows)
    n_pad = rows * 128
    x_flat = jnp.pad(x.reshape(-1), (0, n_pad - n))
    x2d = x_flat.reshape(rows, 128)
    out2d = _pallas_mlp_2d(x2d, packed_params, tile_rows=tile_rows)
    return out2d.reshape(-1)[:n].reshape(n, 1)


def init_params(key):
    """Deterministic init mimicking nn.Linear's U(-1/sqrt(fan_in), 1/sqrt(fan_in))."""
    dims = [(1, 10), (10, 5), (5, 1)]
    params = []
    for (fan_in, fan_out) in dims:
        key, kw, kb = jax.random.split(key, 3)
        bound = 1.0 / jnp.sqrt(float(fan_in))
        w = jax.random.uniform(kw, (fan_in, fan_out), jnp.float32, -bound, bound)
        b = jax.random.uniform(kb, (1, fan_out), jnp.float32, -bound, bound)
        params += [w, b]
    return params


def pack_params(params):
    w1, b1, w2, b2, w3, b3 = params
    packed = jnp.concatenate([
        w1.reshape(-1),   # 10  : w1[0, j]
        b1.reshape(-1),   # 10  : b1[j]
        w2.reshape(-1),   # 50  : w2[j, k] at j*5 + k (row-major)
        b2.reshape(-1),   # 5   : b2[k]
        w3.reshape(-1),   # 5   : w3[k, 0]
        b3.reshape(-1),   # 1   : b3
    ]).astype(jnp.float32)
    assert packed.shape[0] == N_PARAMS
    return packed


def mlp_reference(x, params):
    w1, b1, w2, b2, w3, b3 = params
    h1 = jnp.maximum(x @ w1 + b1, 0.0)
    h2 = jnp.maximum(h1 @ w2 + b2, 0.0)
    return h2 @ w3 + b3


if __name__ == "__main__":
    key = jax.random.PRNGKey(0)
    params = init_params(key)
    packed = pack_params(params)

    # Same input the original script builds: linspace(-3, 3, 1000)[:, None]
    x = jnp.linspace(-3.0, 3.0, 1000, dtype=jnp.float32).reshape(1000, 1)
    out = jax.block_until_ready(mlp_forward(x, packed))
    ref = mlp_reference(x, params)
    assert out.shape == (1000, 1)
    assert jnp.allclose(out, ref, atol=1e-5, rtol=1e-5), "mismatch vs reference (fast path)"

    # Also exercise the general padded / multi-tile path once (N not % 8).
    x_big = jax.random.uniform(jax.random.PRNGKey(1), (4100, 1), jnp.float32, -3.0, 3.0)
    out_big = jax.block_until_ready(mlp_forward(x_big, packed))
    ref_big = mlp_reference(x_big, params)
    assert out_big.shape == (4100, 1)
    assert jnp.allclose(out_big, ref_big, atol=1e-5, rtol=1e-5), "mismatch vs reference (general path)"

    print("KERNEL_OK")
</pallas_src>

<mosaic_0001>
module attributes {stable_mosaic.version = 11 : i64} {
  func.func @mlp_kernel(%arg0: i32, %arg1: memref<8x125xf32, #tpu.memory_space<vmem>>, %arg2: memref<81xf32, #tpu.memory_space<smem>>, %arg3: memref<8x125xf32, #tpu.memory_space<vmem>>) attributes {dimension_semantics = [#tpu.dimension_semantics<parallel>], iteration_bounds = array<i64: 1>, scalar_prefetch = 0 : i64, scratch_operands = 0 : i64, tpu.core_type = #tpu.core_type<tc>, window_params = [{transform_indices = @transform_0, window_bounds = array<i64: 8, 125>}, {transform_indices = @transform_1, window_bounds = array<i64: 81>}, {transform_indices = @transform_2, window_bounds = array<i64: 8, 125>}]} {
    %c0 = arith.constant 0 : index
    %c0_0 = arith.constant 0 : index
    %0 = vector.load %arg1[%c0, %c0_0] : memref<8x125xf32, #tpu.memory_space<vmem>>, vector<8x125xf32>
    %c0_1 = arith.constant 0 : index
    %1 = memref.load %arg2[%c0_1] : memref<81xf32, #tpu.memory_space<smem>>
    %2 = vector.broadcast %1 : f32 to vector<8x125xf32>
    %3 = arith.mulf %0, %2 : vector<8x125xf32>
    %c10 = arith.constant 10 : index
    %4 = memref.load %arg2[%c10] : memref<81xf32, #tpu.memory_space<smem>>
    %5 = vector.broadcast %4 : f32 to vector<8x125xf32>
    %6 = arith.addf %3, %5 : vector<8x125xf32>
    %cst = arith.constant 0.000000e+00 : f32
    %7 = vector.broadcast %cst : f32 to vector<8x125xf32>
    %8 = arith.maximumf %6, %7 : vector<8x125xf32>
    %c20 = arith.constant 20 : index
    %9 = memref.load %arg2[%c20] : memref<81xf32, #tpu.memory_space<smem>>
    %10 = vector.broadcast %9 : f32 to vector<8x125xf32>
    %11 = arith.mulf %8, %10 : vector<8x125xf32>
    %c21 = arith.constant 21 : index
    %12 = memref.load %arg2[%c21] : memref<81xf32, #tpu.memory_space<smem>>
    %13 = vector.broadcast %12 : f32 to vector<8x125xf32>
    %14 = arith.mulf %8, %13 : vector<8x125xf32>
    %c22 = arith.constant 22 : index
    %15 = memref.load %arg2[%c22] : memref<81xf32, #tpu.memory_space<smem>>
    %16 = vector.broadcast %15 : f32 to vector<8x125xf32>
    %17 = arith.mulf %8, %16 : vector<8x125xf32>
    %c23 = arith.constant 23 : index
    %18 = memref.load %arg2[%c23] : memref<81xf32, #tpu.memory_space<smem>>
    %19 = vector.broadcast %18 : f32 to vector<8x125xf32>
    %20 = arith.mulf %8, %19 : vector<8x125xf32>
    %c24 = arith.constant 24 : index
    %21 = memref.load %arg2[%c24] : memref<81xf32, #tpu.memory_space<smem>>
    %22 = vector.broadcast %21 : f32 to vector<8x125xf32>
    %23 = arith.mulf %8, %22 : vector<8x125xf32>
    %c1 = arith.constant 1 : index
    %24 = memref.load %arg2[%c1] : memref<81xf32, #tpu.memory_space<smem>>
    %25 = vector.broadcast %24 : f32 to vector<8x125xf32>
    %26 = arith.mulf %0, %25 : vector<8x125xf32>
    %c11 = arith.constant 11 : index
    %27 = memref.load %arg2[%c11] : memref<81xf32, #tpu.memory_space<smem>>
    %28 = vector.broadcast %27 : f32 to vector<8x125xf32>
    %29 = arith.addf %26, %28 : vector<8x125xf32>
    %cst_2 = arith.constant 0.000000e+00 : f32
    %30 = vector.broadcast %cst_2 : f32 to vector<8x125xf32>
    %31 = arith.maximumf %29, %30 : vector<8x125xf32>
    %c25 = arith.constant 25 : index
    %32 = memref.load %arg2[%c25] : memref<81xf32, #tpu.memory_space<smem>>
    %33 = vector.broadcast %32 : f32 to vector<8x125xf32>
    %34 = arith.mulf %31, %33 : vector<8x125xf32>
    %35 = arith.addf %11, %34 : vector<8x125xf32>
    %c26 = arith.constant 26 : index
    %36 = memref.load %arg2[%c26] : memref<81xf32, #tpu.memory_space<smem>>
    %37 = vector.broadcast %36 : f32 to vector<8x125xf32>
    %38 = arith.mulf %31, %37 : vector<8x125xf32>
    %39 = arith.addf %14, %38 : vector<8x125xf32>
    %c27 = arith.constant 27 : index
    %40 = memref.load %arg2[%c27] : memref<81xf32, #tpu.memory_space<smem>>
    %41 = vector.broadcast %40 : f32 to vector<8x125xf32>
    %42 = arith.mulf %31, %41 : vector<8x125xf32>
    %43 = arith.addf %17, %42 : vector<8x125xf32>
    %c28 = arith.constant 28 : index
    %44 = memref.load %arg2[%c28] : memref<81xf32, #tpu.memory_space<smem>>
    %45 = vector.broadcast %44 : f32 to vector<8x125xf32>
    %46 = arith.mulf %31, %45 : vector<8x125xf32>
    %47 = arith.addf %20, %46 : vector<8x125xf32>
    %c29 = arith.constant 29 : index
    %48 = memref.load %arg2[%c29] : memref<81xf32, #tpu.memory_space<smem>>
    %49 = vector.broadcast %48 : f32 to vector<8x125xf32>
    %50 = arith.mulf %31, %49 : vector<8x125xf32>
    %51 = arith.addf %23, %50 : vector<8x125xf32>
    %c2 = arith.constant 2 : index
    %52 = memref.load %arg2[%c2] : memref<81xf32, #tpu.memory_space<smem>>
    %53 = vector.broadcast %52 : f32 to vector<8x125xf32>
    %54 = arith.mulf %0, %53 : vector<8x125xf32>
    %c12 = arith.constant 12 : index
    %55 = memref.load %arg2[%c12] : memref<81xf32, #tpu.memory_space<smem>>
    %56 = vector.broadcast %55 : f32 to vector<8x125xf32>
    %57 = arith.addf %54, %56 : vector<8x125xf32>
    %cst_3 = arith.constant 0.000000e+00 : f32
    %58 = vector.broadcast %cst_3 : f32 to vector<8x125xf32>
    %59 = arith.maximumf %57, %58 : vector<8x125xf32>
    %c30 = arith.constant 30 : index
    %60 = memref.load %arg2[%c30] : memref<81xf32, #tpu.memory_space<smem>>
    %61 = vector.broadcast %60 : f32 to vector<8x125xf32>
    %62 = arith.mulf %59, %61 : vector<8x125xf32>
    %63 = arith.addf %35, %62 : vector<8x125xf32>
    %c31 = arith.constant 31 : index
    %64 = memref.load %arg2[%c31] : memref<81xf32, #tpu.memory_space<smem>>
    %65 = vector.broadcast %64 : f32 to vector<8x125xf32>
    %66 = arith.mulf %59, %65 : vector<8x125xf32>
    %67 = arith.addf %39, %66 : vector<8x125xf32>
    %c32 = arith.constant 32 : index
    %68 = memref.load %arg2[%c32] : memref<81xf32, #tpu.memory_space<smem>>
    %69 = vector.broadcast %68 : f32 to vector<8x125xf32>
    %70 = arith.mulf %59, %69 : vector<8x125xf32>
    %71 = arith.addf %43, %70 : vector<8x125xf32>
    %c33 = arith.constant 33 : index
    %72 = memref.load %arg2[%c33] : memref<81xf32, #tpu.memory_space<smem>>
    %73 = vector.broadcast %72 : f32 to vector<8x125xf32>
    %74 = arith.mulf %59, %73 : vector<8x125xf32>
    %75 = arith.addf %47, %74 : vector<8x125xf32>
    %c34 = arith.constant 34 : index
    %76 = memref.load %arg2[%c34] : memref<81xf32, #tpu.memory_space<smem>>
    %77 = vector.broadcast %76 : f32 to vector<8x125xf32>
    %78 = arith.mulf %59, %77 : vector<8x125xf32>
    %79 = arith.addf %51, %78 : vector<8x125xf32>
    %c3 = arith.constant 3 : index
    %80 = memref.load %arg2[%c3] : memref<81xf32, #tpu.memory_space<smem>>
    %81 = vector.broadcast %80 : f32 to vector<8x125xf32>
    %82 = arith.mulf %0, %81 : vector<8x125xf32>
    %c13 = arith.constant 13 : index
    %83 = memref.load %arg2[%c13] : memref<81xf32, #tpu.memory_space<smem>>
    %84 = vector.broadcast %83 : f32 to vector<8x125xf32>
    %85 = arith.addf %82, %84 : vector<8x125xf32>
    %cst_4 = arith.constant 0.000000e+00 : f32
    %86 = vector.broadcast %cst_4 : f32 to vector<8x125xf32>
    %87 = arith.maximumf %85, %86 : vector<8x125xf32>
    %c35 = arith.constant 35 : index
    %88 = memref.load %arg2[%c35] : memref<81xf32, #tpu.memory_space<smem>>
    %89 = vector.broadcast %88 : f32 to vector<8x125xf32>
    %90 = arith.mulf %87, %89 : vector<8x125xf32>
    %91 = arith.addf %63, %90 : vector<8x125xf32>
    %c36 = arith.constant 36 : index
    %92 = memref.load %arg2[%c36] : memref<81xf32, #tpu.memory_space<smem>>
    %93 = vector.broadcast %92 : f32 to vector<8x125xf32>
    %94 = arith.mulf %87, %93 : vector<8x125xf32>
    %95 = arith.addf %67, %94 : vector<8x125xf32>
    %c37 = arith.constant 37 : index
    %96 = memref.load %arg2[%c37] : memref<81xf32, #tpu.memory_space<smem>>
    %97 = vector.broadcast %96 : f32 to vector<8x125xf32>
    %98 = arith.mulf %87, %97 : vector<8x125xf32>
    %99 = arith.addf %71, %98 : vector<8x125xf32>
    %c38 = arith.constant 38 : index
    %100 = memref.load %arg2[%c38] : memref<81xf32, #tpu.memory_space<smem>>
    %101 = vector.broadcast %100 : f32 to vector<8x125xf32>
    %102 = arith.mulf %87, %101 : vector<8x125xf32>
    %103 = arith.addf %75, %102 : vector<8x125xf32>
    %c39 = arith.constant 39 : index
    %104 = memref.load %arg2[%c39] : memref<81xf32, #tpu.memory_space<smem>>
    %105 = vector.broadcast %104 : f32 to vector<8x125xf32>
    %106 = arith.mulf %87, %105 : vector<8x125xf32>
    %107 = arith.addf %79, %106 : vector<8x125xf32>
    %c4 = arith.constant 4 : index
    %108 = memref.load %arg2[%c4] : memref<81xf32, #tpu.memory_space<smem>>
    %109 = vector.broadcast %108 : f32 to vector<8x125xf32>
    %110 = arith.mulf %0, %109 : vector<8x125xf32>
    %c14 = arith.constant 14 : index
    %111 = memref.load %arg2[%c14] : memref<81xf32, #tpu.memory_space<smem>>
    %112 = vector.broadcast %111 : f32 to vector<8x125xf32>
    %113 = arith.addf %110, %112 : vector<8x125xf32>
    %cst_5 = arith.constant 0.000000e+00 : f32
    %114 = vector.broadcast %cst_5 : f32 to vector<8x125xf32>
    %115 = arith.maximumf %113, %114 : vector<8x125xf32>
    %c40 = arith.constant 40 : index
    %116 = memref.load %arg2[%c40] : memref<81xf32, #tpu.memory_space<smem>>
    %117 = vector.broadcast %116 : f32 to vector<8x125xf32>
    %118 = arith.mulf %115, %117 : vector<8x125xf32>
    %119 = arith.addf %91, %118 : vector<8x125xf32>
    %c41 = arith.constant 41 : index
    %120 = memref.load %arg2[%c41] : memref<81xf32, #tpu.memory_space<smem>>
    %121 = vector.broadcast %120 : f32 to vector<8x125xf32>
    %122 = arith.mulf %115, %121 : vector<8x125xf32>
    %123 = arith.addf %95, %122 : vector<8x125xf32>
    %c42 = arith.constant 42 : index
    %124 = memref.load %arg2[%c42] : memref<81xf32, #tpu.memory_space<smem>>
    %125 = vector.broadcast %124 : f32 to vector<8x125xf32>
    %126 = arith.mulf %115, %125 : vector<8x125xf32>
    %127 = arith.addf %99, %126 : vector<8x125xf32>
    %c43 = arith.constant 43 : index
    %128 = memref.load %arg2[%c43] : memref<81xf32, #tpu.memory_space<smem>>
    %129 = vector.broadcast %128 : f32 to vector<8x125xf32>
    %130 = arith.mulf %115, %129 : vector<8x125xf32>
    %131 = arith.addf %103, %130 : vector<8x125xf32>
    %c44 = arith.constant 44 : index
    %132 = memref.load %arg2[%c44] : memref<81xf32, #tpu.memory_space<smem>>
    %133 = vector.broadcast %132 : f32 to vector<8x125xf32>
    %134 = arith.mulf %115, %133 : vector<8x125xf32>
    %135 = arith.addf %107, %134 : vector<8x125xf32>
    %c5 = arith.constant 5 : index
    %136 = memref.load %arg2[%c5] : memref<81xf32, #tpu.memory_space<smem>>
    %137 = vector.broadcast %136 : f32 to vector<8x125xf32>
    %138 = arith.mulf %0, %137 : vector<8x125xf32>
    %c15 = arith.constant 15 : index
    %139 = memref.load %arg2[%c15] : memref<81xf32, #tpu.memory_space<smem>>
    %140 = vector.broadcast %139 : f32 to vector<8x125xf32>
    %141 = arith.addf %138, %140 : vector<8x125xf32>
    %cst_6 = arith.constant 0.000000e+00 : f32
    %142 = vector.broadcast %cst_6 : f32 to vector<8x125xf32>
    %143 = arith.maximumf %141, %142 : vector<8x125xf32>
    %c45 = arith.constant 45 : index
    %144 = memref.load %arg2[%c45] : memref<81xf32, #tpu.memory_space<smem>>
    %145 = vector.broadcast %144 : f32 to vector<8x125xf32>
    %146 = arith.mulf %143, %145 : vector<8x125xf32>
    %147 = arith.addf %119, %146 : vector<8x125xf32>
    %c46 = arith.constant 46 : index
    %148 = memref.load %arg2[%c46] : memref<81xf32, #tpu.memory_space<smem>>
    %149 = vector.broadcast %148 : f32 to vector<8x125xf32>
    %150 = arith.mulf %143, %149 : vector<8x125xf32>
    %151 = arith.addf %123, %150 : vector<8x125xf32>
    %c47 = arith.constant 47 : index
    %152 = memref.load %arg2[%c47] : memref<81xf32, #tpu.memory_space<smem>>
    %153 = vector.broadcast %152 : f32 to vector<8x125xf32>
    %154 = arith.mulf %143, %153 : vector<8x125xf32>
    %155 = arith.addf %127, %154 : vector<8x125xf32>
    %c48 = arith.constant 48 : index
    %156 = memref.load %arg2[%c48] : memref<81xf32, #tpu.memory_space<smem>>
    %157 = vector.broadcast %156 : f32 to vector<8x125xf32>
    %158 = arith.mulf %143, %157 : vector<8x125xf32>
    %159 = arith.addf %131, %158 : vector<8x125xf32>
    %c49 = arith.constant 49 : index
    %160 = memref.load %arg2[%c49] : memref<81xf32, #tpu.memory_space<smem>>
    %161 = vector.broadcast %160 : f32 to vector<8x125xf32>
    %162 = arith.mulf %143, %161 : vector<8x125xf32>
    %163 = arith.addf %135, %162 : vector<8x125xf32>
    %c6 = arith.constant 6 : index
    %164 = memref.load %arg2[%c6] : memref<81xf32, #tpu.memory_space<smem>>
    %165 = vector.broadcast %164 : f32 to vector<8x125xf32>
    %166 = arith.mulf %0, %165 : vector<8x125xf32>
    %c16 = arith.constant 16 : index
    %167 = memref.load %arg2[%c16] : memref<81xf32, #tpu.memory_space<smem>>
    %168 = vector.broadcast %167 : f32 to vector<8x125xf32>
    %169 = arith.addf %166, %168 : vector<8x125xf32>
    %cst_7 = arith.constant 0.000000e+00 : f32
    %170 = vector.broadcast %cst_7 : f32 to vector<8x125xf32>
    %171 = arith.maximumf %169, %170 : vector<8x125xf32>
    %c50 = arith.constant 50 : index
    %172 = memref.load %arg2[%c50] : memref<81xf32, #tpu.memory_space<smem>>
    %173 = vector.broadcast %172 : f32 to vector<8x125xf32>
    %174 = arith.mulf %171, %173 : vector<8x125xf32>
    %175 = arith.addf %147, %174 : vector<8x125xf32>
    %c51 = arith.constant 51 : index
    %176 = memref.load %arg2[%c51] : memref<81xf32, #tpu.memory_space<smem>>
    %177 = vector.broadcast %176 : f32 to vector<8x125xf32>
    %178 = arith.mulf %171, %177 : vector<8x125xf32>
    %179 = arith.addf %151, %178 : vector<8x125xf32>
    %c52 = arith.constant 52 : index
    %180 = memref.load %arg2[%c52] : memref<81xf32, #tpu.memory_space<smem>>
    %181 = vector.broadcast %180 : f32 to vector<8x125xf32>
    %182 = arith.mulf %171, %181 : vector<8x125xf32>
    %183 = arith.addf %155, %182 : vector<8x125xf32>
    %c53 = arith.constant 53 : index
    %184 = memref.load %arg2[%c53] : memref<81xf32, #tpu.memory_space<smem>>
    %185 = vector.broadcast %184 : f32 to vector<8x125xf32>
    %186 = arith.mulf %171, %185 : vector<8x125xf32>
    %187 = arith.addf %159, %186 : vector<8x125xf32>
    %c54 = arith.constant 54 : index
    %188 = memref.load %arg2[%c54] : memref<81xf32, #tpu.memory_space<smem>>
    %189 = vector.broadcast %188 : f32 to vector<8x125xf32>
    %190 = arith.mulf %171, %189 : vector<8x125xf32>
    %191 = arith.addf %163, %190 : vector<8x125xf32>
    %c7 = arith.constant 7 : index
    %192 = memref.load %arg2[%c7] : memref<81xf32, #tpu.memory_space<smem>>
    %193 = vector.broadcast %192 : f32 to vector<8x125xf32>
    %194 = arith.mulf %0, %193 : vector<8x125xf32>
    %c17 = arith.constant 17 : index
    %195 = memref.load %arg2[%c17] : memref<81xf32, #tpu.memory_space<smem>>
    %196 = vector.broadcast %195 : f32 to vector<8x125xf32>
    %197 = arith.addf %194, %196 : vector<8x125xf32>
    %cst_8 = arith.constant 0.000000e+00 : f32
    %198 = vector.broadcast %cst_8 : f32 to vector<8x125xf32>
    %199 = arith.maximumf %197, %198 : vector<8x125xf32>
    %c55 = arith.constant 55 : index
    %200 = memref.load %arg2[%c55] : memref<81xf32, #tpu.memory_space<smem>>
    %201 = vector.broadcast %200 : f32 to vector<8x125xf32>
    %202 = arith.mulf %199, %201 : vector<8x125xf32>
    %203 = arith.addf %175, %202 : vector<8x125xf32>
    %c56 = arith.constant 56 : index
    %204 = memref.load %arg2[%c56] : memref<81xf32, #tpu.memory_space<smem>>
    %205 = vector.broadcast %204 : f32 to vector<8x125xf32>
    %206 = arith.mulf %199, %205 : vector<8x125xf32>
    %207 = arith.addf %179, %206 : vector<8x125xf32>
    %c57 = arith.constant 57 : index
    %208 = memref.load %arg2[%c57] : memref<81xf32, #tpu.memory_space<smem>>
    %209 = vector.broadcast %208 : f32 to vector<8x125xf32>
    %210 = arith.mulf %199, %209 : vector<8x125xf32>
    %211 = arith.addf %183, %210 : vector<8x125xf32>
    %c58 = arith.constant 58 : index
    %212 = memref.load %arg2[%c58] : memref<81xf32, #tpu.memory_space<smem>>
    %213 = vector.broadcast %212 : f32 to vector<8x125xf32>
    %214 = arith.mulf %199, %213 : vector<8x125xf32>
    %215 = arith.addf %187, %214 : vector<8x125xf32>
    %c59 = arith.constant 59 : index
    %216 = memref.load %arg2[%c59] : memref<81xf32, #tpu.memory_space<smem>>
    %217 = vector.broadcast %216 : f32 to vector<8x125xf32>
    %218 = arith.mulf %199, %217 : vector<8x125xf32>
    %219 = arith.addf %191, %218 : vector<8x125xf32>
    %c8 = arith.constant 8 : index
    %220 = memref.load %arg2[%c8] : memref<81xf32, #tpu.memory_space<smem>>
    %221 = vector.broadcast %220 : f32 to vector<8x125xf32>
    %222 = arith.mulf %0, %221 : vector<8x125xf32>
    %c18 = arith.constant 18 : index
    %223 = memref.load %arg2[%c18] : memref<81xf32, #tpu.memory_space<smem>>
    %224 = vector.broadcast %223 : f32 to vector<8x125xf32>
    %225 = arith.addf %222, %224 : vector<8x125xf32>
    %cst_9 = arith.constant 0.000000e+00 : f32
    %226 = vector.broadcast %cst_9 : f32 to vector<8x125xf32>
    %227 = arith.maximumf %225, %226 : vector<8x125xf32>
    %c60 = arith.constant 60 : index
    %228 = memref.load %arg2[%c60] : memref<81xf32, #tpu.memory_space<smem>>
    %229 = vector.broadcast %228 : f32 to vector<8x125xf32>
    %230 = arith.mulf %227, %229 : vector<8x125xf32>
    %231 = arith.addf %203, %230 : vector<8x125xf32>
    %c61 = arith.constant 61 : index
    %232 = memref.load %arg2[%c61] : memref<81xf32, #tpu.memory_space<smem>>
    %233 = vector.broadcast %232 : f32 to vector<8x125xf32>
    %234 = arith.mulf %227, %233 : vector<8x125xf32>
    %235 = arith.addf %207, %234 : vector<8x125xf32>
    %c62 = arith.constant 62 : index
    %236 = memref.load %arg2[%c62] : memref<81xf32, #tpu.memory_space<smem>>
    %237 = vector.broadcast %236 : f32 to vector<8x125xf32>
    %238 = arith.mulf %227, %237 : vector<8x125xf32>
    %239 = arith.addf %211, %238 : vector<8x125xf32>
    %c63 = arith.constant 63 : index
    %240 = memref.load %arg2[%c63] : memref<81xf32, #tpu.memory_space<smem>>
    %241 = vector.broadcast %240 : f32 to vector<8x125xf32>
    %242 = arith.mulf %227, %241 : vector<8x125xf32>
    %243 = arith.addf %215, %242 : vector<8x125xf32>
    %c64 = arith.constant 64 : index
    %244 = memref.load %arg2[%c64] : memref<81xf32, #tpu.memory_space<smem>>
    %245 = vector.broadcast %244 : f32 to vector<8x125xf32>
    %246 = arith.mulf %227, %245 : vector<8x125xf32>
    %247 = arith.addf %219, %246 : vector<8x125xf32>
    %c9 = arith.constant 9 : index
    %248 = memref.load %arg2[%c9] : memref<81xf32, #tpu.memory_space<smem>>
    %249 = vector.broadcast %248 : f32 to vector<8x125xf32>
    %250 = arith.mulf %0, %249 : vector<8x125xf32>
    %c19 = arith.constant 19 : index
    %251 = memref.load %arg2[%c19] : memref<81xf32, #tpu.memory_space<smem>>
    %252 = vector.broadcast %251 : f32 to vector<8x125xf32>
    %253 = arith.addf %250, %252 : vector<8x125xf32>
    %cst_10 = arith.constant 0.000000e+00 : f32
    %254 = vector.broadcast %cst_10 : f32 to vector<8x125xf32>
    %255 = arith.maximumf %253, %254 : vector<8x125xf32>
    %c65 = arith.constant 65 : index
    %256 = memref.load %arg2[%c65] : memref<81xf32, #tpu.memory_space<smem>>
    %257 = vector.broadcast %256 : f32 to vector<8x125xf32>
    %258 = arith.mulf %255, %257 : vector<8x125xf32>
    %259 = arith.addf %231, %258 : vector<8x125xf32>
    %c66 = arith.constant 66 : index
    %260 = memref.load %arg2[%c66] : memref<81xf32, #tpu.memory_space<smem>>
    %261 = vector.broadcast %260 : f32 to vector<8x125xf32>
    %262 = arith.mulf %255, %261 : vector<8x125xf32>
    %263 = arith.addf %235, %262 : vector<8x125xf32>
    %c67 = arith.constant 67 : index
    %264 = memref.load %arg2[%c67] : memref<81xf32, #tpu.memory_space<smem>>
    %265 = vector.broadcast %264 : f32 to vector<8x125xf32>
    %266 = arith.mulf %255, %265 : vector<8x125xf32>
    %267 = arith.addf %239, %266 : vector<8x125xf32>
    %c68 = arith.constant 68 : index
    %268 = memref.load %arg2[%c68] : memref<81xf32, #tpu.memory_space<smem>>
    %269 = vector.broadcast %268 : f32 to vector<8x125xf32>
    %270 = arith.mulf %255, %269 : vector<8x125xf32>
    %271 = arith.addf %243, %270 : vector<8x125xf32>
    %c69 = arith.constant 69 : index
    %272 = memref.load %arg2[%c69] : memref<81xf32, #tpu.memory_space<smem>>
    %273 = vector.broadcast %272 : f32 to vector<8x125xf32>
    %274 = arith.mulf %255, %273 : vector<8x125xf32>
    %275 = arith.addf %247, %274 : vector<8x125xf32>
    %c70 = arith.constant 70 : index
    %276 = memref.load %arg2[%c70] : memref<81xf32, #tpu.memory_space<smem>>
    %277 = vector.broadcast %276 : f32 to vector<8x125xf32>
    %278 = arith.addf %259, %277 : vector<8x125xf32>
    %cst_11 = arith.constant 0.000000e+00 : f32
    %279 = vector.broadcast %cst_11 : f32 to vector<8x125xf32>
    %280 = arith.maximumf %278, %279 : vector<8x125xf32>
    %c75 = arith.constant 75 : index
    %281 = memref.load %arg2[%c75] : memref<81xf32, #tpu.memory_space<smem>>
    %282 = vector.broadcast %281 : f32 to vector<8x125xf32>
    %283 = arith.mulf %280, %282 : vector<8x125xf32>
    %c71 = arith.constant 71 : index
    %284 = memref.load %arg2[%c71] : memref<81xf32, #tpu.memory_space<smem>>
    %285 = vector.broadcast %284 : f32 to vector<8x125xf32>
    %286 = arith.addf %263, %285 : vector<8x125xf32>
    %cst_12 = arith.constant 0.000000e+00 : f32
    %287 = vector.broadcast %cst_12 : f32 to vector<8x125xf32>
    %288 = arith.maximumf %286, %287 : vector<8x125xf32>
    %c76 = arith.constant 76 : index
    %289 = memref.load %arg2[%c76] : memref<81xf32, #tpu.memory_space<smem>>
    %290 = vector.broadcast %289 : f32 to vector<8x125xf32>
    %291 = arith.mulf %288, %290 : vector<8x125xf32>
    %292 = arith.addf %283, %291 : vector<8x125xf32>
    %c72 = arith.constant 72 : index
    %293 = memref.load %arg2[%c72] : memref<81xf32, #tpu.memory_space<smem>>
    %294 = vector.broadcast %293 : f32 to vector<8x125xf32>
    %295 = arith.addf %267, %294 : vector<8x125xf32>
    %cst_13 = arith.constant 0.000000e+00 : f32
    %296 = vector.broadcast %cst_13 : f32 to vector<8x125xf32>
    %297 = arith.maximumf %295, %296 : vector<8x125xf32>
    %c77 = arith.constant 77 : index
    %298 = memref.load %arg2[%c77] : memref<81xf32, #tpu.memory_space<smem>>
    %299 = vector.broadcast %298 : f32 to vector<8x125xf32>
    %300 = arith.mulf %297, %299 : vector<8x125xf32>
    %301 = arith.addf %292, %300 : vector<8x125xf32>
    %c73 = arith.constant 73 : index
    %302 = memref.load %arg2[%c73] : memref<81xf32, #tpu.memory_space<smem>>
    %303 = vector.broadcast %302 : f32 to vector<8x125xf32>
    %304 = arith.addf %271, %303 : vector<8x125xf32>
    %cst_14 = arith.constant 0.000000e+00 : f32
    %305 = vector.broadcast %cst_14 : f32 to vector<8x125xf32>
    %306 = arith.maximumf %304, %305 : vector<8x125xf32>
    %c78 = arith.constant 78 : index
    %307 = memref.load %arg2[%c78] : memref<81xf32, #tpu.memory_space<smem>>
    %308 = vector.broadcast %307 : f32 to vector<8x125xf32>
    %309 = arith.mulf %306, %308 : vector<8x125xf32>
    %310 = arith.addf %301, %309 : vector<8x125xf32>
    %c74 = arith.constant 74 : index
    %311 = memref.load %arg2[%c74] : memref<81xf32, #tpu.memory_space<smem>>
    %312 = vector.broadcast %311 : f32 to vector<8x125xf32>
    %313 = arith.addf %275, %312 : vector<8x125xf32>
    %cst_15 = arith.constant 0.000000e+00 : f32
    %314 = vector.broadcast %cst_15 : f32 to vector<8x125xf32>
    %315 = arith.maximumf %313, %314 : vector<8x125xf32>
    %c79 = arith.constant 79 : index
    %316 = memref.load %arg2[%c79] : memref<81xf32, #tpu.memory_space<smem>>
    %317 = vector.broadcast %316 : f32 to vector<8x125xf32>
    %318 = arith.mulf %315, %317 : vector<8x125xf32>
    %319 = arith.addf %310, %318 : vector<8x125xf32>
    %c80 = arith.constant 80 : index
    %320 = memref.load %arg2[%c80] : memref<81xf32, #tpu.memory_space<smem>>
    %321 = vector.broadcast %320 : f32 to vector<8x125xf32>
    %322 = arith.addf %319, %321 : vector<8x125xf32>
    %c0_16 = arith.constant 0 : index
    %c0_17 = arith.constant 0 : index
    %323 = vector.load %arg3[%c0_16, %c0_17] : memref<8x125xf32, #tpu.memory_space<vmem>>, vector<8x125xf32>
    tpu.vector_store %arg3[%c0_16, %c0_17], %322 {strides = array<i32>} : memref<8x125xf32, #tpu.memory_space<vmem>>, vector<8x125xf32>,
    return
  }
  func.func @transform_0(%arg0: i32) -> (i32, i32) {
    %c0_i32 = arith.constant 0 : i32
    %c0_i32_0 = arith.constant 0 : i32
    return %arg0, %c0_i32 : i32, i32
  }
  func.func @transform_1(%arg0: i32) -> i32 {
    %c0_i32 = arith.constant 0 : i32
    %c0_i32_0 = arith.constant 0 : i32
    return %c0_i32 : i32
  }
  func.func @transform_2(%arg0: i32) -> (i32, i32) {
    %c0_i32 = arith.constant 0 : i32
    %c0_i32_0 = arith.constant 0 : i32
    return %arg0, %c0_i32 : i32, i32
  }
}

</mosaic_0001>

<bundles_post_ra>
// kernel: tpu_custom_call.1
= control target key start
LH: loop header
LB: loop body
LE: loop exit
PB: predicated region body
PF: predicated region fallthrough
CT: control target
= control target key end

     0   :  { %7 = vsyncpa [#allocation3], 0  ;;  %s790_s0 = inlined_call_operand.hbm [shape: f32[8,125], index: 0, kind: input, shape index: {}]   ;;  %s791_s1 = inlined_call_operand.vmem [shape: f32[81], index: 1, kind: input, shape index: {}]   ;;  %s792_s2 = inlined_call_operand.hbm [shape: f32[8,125], index: 2, kind: output, shape index: {}]  }
   0x1   :  { %8 = vsyncpa [#allocation5], 0 }
   0x2   :  { %9 = vsyncpa [#allocation4], 0  ;;  %s26_s11 = sshll.u32 %s791_s1, 4  ;;  %s508_s12 = smov [#allocation2]   ;;  %s27_s11 = int_to_ptr.vmem [resolvable:$true] %s26_s11 }
   0x3   :  { %s16_s13 = sshll.u32 %s508_s12, 4  ;;  %s446_s16 = scalar_lea.hbm %s790_s0, 128  ;;  %s17_s13 = int_to_ptr.vmem [resolvable:$true] %s16_s13 }
   0x4   :  { %p447_p0 = scmp.ne.s32.totalorder %s790_s0, %s446_s16  ;;  %p450_p1 = scmp.lt.u32.totalorder %s446_s16, %s790_s0 }
   0x6   :  { %p452_p2 = pnand %p450_p1, %p447_p0 }
   0x8   :  { %455 = shalt.err (!%p452_p2)
}
   0x9   :  { %s456_s21 = scalar_lea.vmem %s17_s13, 128  ;;  %p461_p4 = scmp.lt.s32.totalorder %s17_s13, %s17_s13 }
   0xa   :  { %p457_p3 = scmp.ne.s32.totalorder %s17_s13, %s456_s21  ;;  %p462_p5 = scmp.lt.s32.totalorder %s456_s21, %s456_s21 }
   0xc   :  { %p463_p6 = por %p462_p5, %p461_p4 }
   0xe   :  { %p464_p7 = pnand %p463_p6, %p457_p3 }
  0x10   :  { %467 = shalt.err (!%p464_p7)
}
  0x11   :  { %19 = dma.hbm_to_vmem [thread:$0]  %s790_s0, 128, %s17_s13, [#allocation3]  }
  0x12   :  { %s468_s23 = scalar_lea.vmem %s27_s11, 16  ;;  %p473_p9 = scmp.lt.s32.totalorder %s27_s11, %s27_s11 }
  0x13   :  { %p469_p8 = scmp.ne.s32.totalorder %s27_s11, %s468_s23  ;;  %p474_p10 = scmp.lt.s32.totalorder %s468_s23, %s468_s23 }
  0x15   :  { %p475_p11 = por %p474_p10, %p473_p9 }
  0x17   :  { %p476_p12 = pnand %p475_p11, %p469_p8 }
  0x19   :  { %479 = shalt.err (!%p476_p12)
}
  0x1a   :  { %s509_s24 = smov [#allocation6]  }
  0x1b   :  { %29 = dma.vmem_to_smem %s27_s11, 16, %s509_s24, [#allocation5]  }
  0x1c   :  { %502 = dma.done.wait [#allocation3], 128  }
  0x1d   :  { %503 = vsyncadd [#allocation3], 4294967168 }
  0x1e   :  { %504 = dma.done.wait [#allocation5], 16  }
  0x1f   :  { %505 = vsyncadd [#allocation5], 4294967280 }
  0x20   :  { %36 = sfence }
  0x21   :  { %s38_s25 = sld [smem:[#allocation6]]  ;;  %s363_s26 = sld [smem:[#allocation6 + $0xa]]  ;;  %v551_v0 = vld [vmem:[#allocation2] sm:$0xff]  ;;  %vm345_vm0 = vcmask 1022976  }
  0x22   :  { %s541_s27 = sld [smem:[#allocation6 + $0x14]]  ;;  %s543_s28 = sld [smem:[#allocation6 + $0x15]] }
  0x23   :  { %s545_s0 = sld [smem:[#allocation6 + $0x16]]  ;;  %s547_s29 = sld [smem:[#allocation6 + $0x17]] }
  0x24   :  { %s549_s30 = sld [smem:[#allocation6 + $0x18]]  ;;  %s369_s3 = sld [smem:[#allocation6 + $0x1]] }
  0x25   :  { %s370_s4 = sld [smem:[#allocation6 + $0xb]]  ;;  %s553_s5 = sld [smem:[#allocation6 + $0x19]] }
  0x26   :  { %s555_s6 = sld [smem:[#allocation6 + $0x1a]]  ;;  %s557_s7 = sld [smem:[#allocation6 + $0x1b]] }
  0x27   :  { %v39_v1 = vstv %s38_s25  ;;  %v42_v2 = vstv %s363_s26  ;;  %s559_s8 = sld [smem:[#allocation6 + $0x1c]]  ;;  %s561_s9 = sld [smem:[#allocation6 + $0x1d]] }
  0x28   :  { %v40_v3 = vmul.f32 %v39_v1, %v551_v0  ;;  %s564_s10 = sld [smem:[#allocation6 + $0x2]]  ;;  %s566_s11 = sld [smem:[#allocation6 + $0xc]]  ;;  %v46_v6 = vstv %s541_s27  ;;  %v49_v10 = vstv %s543_s28 }
  0x29   :  { %s568_s12 = sld [smem:[#allocation6 + $0x1e]]  ;;  %s570_s13 = sld [smem:[#allocation6 + $0x1f]]  ;;  %v52_v11 = vstv %s545_s0  ;;  %v55_v12 = vstv %s547_s29 }
  0x2a   :  { %v43_v4 = vadd.f32 %v42_v2, %v40_v3  ;;  %v61_v5 = vstv %s369_s3  ;;  %s572_s14 = sld [smem:[#allocation6 + $0x20]]  ;;  %s576_s15 = sld [smem:[#allocation6 + $0x21]]  ;;  %v58_v13 = vstv %s549_s30 }
  0x2b   :  { %v62_v7 = vmul.f32 %v61_v5, %v551_v0  ;;  %v64_v8 = vstv %s370_s4  ;;  %s578_s16 = sld [smem:[#allocation6 + $0x22]]  ;;  %s583_s17 = sld [smem:[#allocation6 + $0x3]]  ;;  %v68_v15 = vstv %s553_s5 }
  0x2c   :  { %v44_v9 = vmax.f32 %v43_v4, 0.0  ;;  %s585_s18 = sld [smem:[#allocation6 + $0xd]]  ;;  %v72_v16 = vstv %s555_s6  ;;  %v76_v18 = vstv %s557_s7  ;;  %s593_s19 = sld [smem:[#allocation6 + $0x23]] }
  0x2d   :  { %v65_v14 = vadd.f32 %v64_v8, %v62_v7  ;;  %v80_v19 = vstv %s559_s8  ;;  %v84_v20 = vstv %s561_s9  ;;  %s597_s20 = sld [smem:[#allocation6 + $0x24]]  ;;  %s599_s21 = sld [smem:[#allocation6 + $0x25]] }
  0x2e   :  { %v47_v17 = vmul.f32 %v46_v6, %v44_v9  ;;  %v50_v21 = vmul.f32 %v49_v10, %v44_v9  ;;  %v88_v23 = vstv %s564_s10  ;;  %v91_v24 = vstv %s566_s11  ;;  %s602_s1 = sld [smem:[#allocation6 + $0x26]]  ;;  %s604_s22 = sld [smem:[#allocation6 + $0x27]] }
  0x2f   :  { %v66_v22 = vmax.f32 %v65_v14, 0.0  ;;  %v53_v25 = vmul.f32 %v52_v11, %v44_v9  ;;  %v56_v26 = vmul.f32 %v55_v12, %v44_v9  ;;  %v59_v27 = vmul.f32 %v58_v13, %v44_v9  ;;  %s606_s23 = sld [smem:[#allocation6 + $0x4]]  ;;  %s608_s24 = sld [smem:[#allocation6 + $0xe]] }
  0x30   :  { %v89_v28 = vmul.f32 %v88_v23, %v551_v0  ;;  %v95_v35 = vstv %s568_s12  ;;  %v99_v36 = vstv %s570_s13  ;;  %v103_v38 = vstv %s572_s14  ;;  %s615_s25 = sld [smem:[#allocation6 + $0x28]]  ;;  %s619_s26 = sld [smem:[#allocation6 + $0x29]] }
  0x31   :  { %v69_v29 = vmul.f32 %v68_v15, %v66_v22  ;;  %v73_v30 = vmul.f32 %v72_v16, %v66_v22  ;;  %v77_v31 = vmul.f32 %v76_v18, %v66_v22  ;;  %v81_v32 = vmul.f32 %v80_v19, %v66_v22  ;;  %s621_s27 = sld [smem:[#allocation6 + $0x2a]]  ;;  %s624_s28 = sld [smem:[#allocation6 + $0x2b]] }
  0x32   :  { %v85_v33 = vmul.f32 %v84_v20, %v66_v22  ;;  %v92_v34 = vadd.f32 %v91_v24, %v89_v28  ;;  %v107_v39 = vstv %s576_s15  ;;  %v111_v40 = vstv %s578_s16  ;;  %s626_s0 = sld [smem:[#allocation6 + $0x2c]]  ;;  %s628_s29 = sld [smem:[#allocation6 + $0x5]] }
  0x33   :  { %v70_v37 = vadd.f32 %v69_v29, %v47_v17  ;;  %v74_v41 = vadd.f32 %v73_v30, %v50_v21  ;;  %v115_v43 = vstv %s583_s17  ;;  %v118_v44 = vstv %s585_s18  ;;  %s630_s30 = sld [smem:[#allocation6 + $0xf]]  ;;  %s637_s3 = sld [smem:[#allocation6 + $0x2d]] }
  0x34   :  { %v93_v42 = vmax.f32 %v92_v34, 0.0  ;;  %v78_v45 = vadd.f32 %v77_v31, %v53_v25  ;;  %v82_v46 = vadd.f32 %v81_v32, %v56_v26  ;;  %v86_v47 = vadd.f32 %v85_v33, %v59_v27  ;;  %s641_s4 = sld [smem:[#allocation6 + $0x2e]]  ;;  %s643_s5 = sld [smem:[#allocation6 + $0x2f]] }
  0x35   :  { %v116_v48 = vmul.f32 %v115_v43, %v551_v0  ;;  %v122_v55 = vstv %s593_s19  ;;  %v126_v56 = vstv %s597_s20  ;;  %v130_v58 = vstv %s599_s21  ;;  %s646_s6 = sld [smem:[#allocation6 + $0x30]]  ;;  %s648_s7 = sld [smem:[#allocation6 + $0x31]] }
  0x36   :  { %v96_v49 = vmul.f32 %v95_v35, %v93_v42  ;;  %v100_v50 = vmul.f32 %v99_v36, %v93_v42  ;;  %v104_v51 = vmul.f32 %v103_v38, %v93_v42  ;;  %v108_v52 = vmul.f32 %v107_v39, %v93_v42  ;;  %s650_s8 = sld [smem:[#allocation6 + $0x6]]  ;;  %s652_s9 = sld [smem:[#allocation6 + $0x10]] }
  0x37   :  { %v112_v53 = vmul.f32 %v111_v40, %v93_v42  ;;  %v119_v54 = vadd.f32 %v118_v44, %v116_v48  ;;  %v134_v59 = vstv %s602_s1  ;;  %v138_v60 = vstv %s604_s22  ;;  %s659_s10 = sld [smem:[#allocation6 + $0x32]]  ;;  %s663_s11 = sld [smem:[#allocation6 + $0x33]] }
  0x38   :  { %v97_v57 = vadd.f32 %v96_v49, %v70_v37  ;;  %v101_v61 = vadd.f32 %v100_v50, %v74_v41  ;;  %v142_v63 = vstv %s606_s23  ;;  %v145_v1 = vstv %s608_s24  ;;  %s665_s12 = sld [smem:[#allocation6 + $0x34]]  ;;  %s668_s13 = sld [smem:[#allocation6 + $0x35]] }
  0x39   :  { %v120_v62 = vmax.f32 %v119_v54, 0.0  ;;  %v105_v2 = vadd.f32 %v104_v51, %v78_v45  ;;  %v109_v3 = vadd.f32 %v108_v52, %v82_v46  ;;  %v113_v4 = vadd.f32 %v112_v53, %v86_v47  ;;  %s670_s14 = sld [smem:[#allocation6 + $0x36]]  ;;  %s672_s15 = sld [smem:[#allocation6 + $0x7]] }
  0x3a   :  { %v143_v5 = vmul.f32 %v142_v63, %v551_v0  ;;  %v149_v12 = vstv %s615_s25  ;;  %v153_v13 = vstv %s619_s26  ;;  %v157_v15 = vstv %s621_s27  ;;  %s674_s16 = sld [smem:[#allocation6 + $0x11]]  ;;  %s681_s17 = sld [smem:[#allocation6 + $0x37]] }
  0x3b   :  { %v123_v6 = vmul.f32 %v122_v55, %v120_v62  ;;  %v127_v7 = vmul.f32 %v126_v56, %v120_v62  ;;  %v131_v8 = vmul.f32 %v130_v58, %v120_v62  ;;  %v135_v9 = vmul.f32 %v134_v59, %v120_v62  ;;  %s685_s18 = sld [smem:[#allocation6 + $0x38]]  ;;  %s687_s19 = sld [smem:[#allocation6 + $0x39]] }
  0x3c   :  { %v139_v10 = vmul.f32 %v138_v60, %v120_v62  ;;  %v146_v11 = vadd.f32 %v145_v1, %v143_v5  ;;  %v161_v16 = vstv %s624_s28  ;;  %v165_v17 = vstv %s626_s0  ;;  %s690_s20 = sld [smem:[#allocation6 + $0x3a]]  ;;  %s692_s21 = sld [smem:[#allocation6 + $0x3b]] }
  0x3d   :  { %v124_v14 = vadd.f32 %v123_v6, %v97_v57  ;;  %v128_v18 = vadd.f32 %v127_v7, %v101_v61  ;;  %v169_v20 = vstv %s628_s29  ;;  %v172_v21 = vstv %s630_s30  ;;  %s694_s1 = sld [smem:[#allocation6 + $0x8]]  ;;  %s696_s22 = sld [smem:[#allocation6 + $0x12]] }
  0x3e   :  { %v147_v19 = vmax.f32 %v146_v11, 0.0  ;;  %v132_v22 = vadd.f32 %v131_v8, %v105_v2  ;;  %v136_v23 = vadd.f32 %v135_v9, %v109_v3  ;;  %v140_v24 = vadd.f32 %v139_v10, %v113_v4  ;;  %s703_s23 = sld [smem:[#allocation6 + $0x3c]]  ;;  %s707_s24 = sld [smem:[#allocation6 + $0x3d]] }
  0x3f   :  { %v170_v25 = vmul.f32 %v169_v20, %v551_v0  ;;  %v176_v32 = vstv %s637_s3  ;;  %v180_v33 = vstv %s641_s4  ;;  %v184_v35 = vstv %s643_s5  ;;  %s709_s25 = sld [smem:[#allocation6 + $0x3e]]  ;;  %s712_s26 = sld [smem:[#allocation6 + $0x3f]] }
  0x40   :  { %v150_v26 = vmul.f32 %v149_v12, %v147_v19  ;;  %v154_v27 = vmul.f32 %v153_v13, %v147_v19  ;;  %v158_v28 = vmul.f32 %v157_v15, %v147_v19  ;;  %v162_v29 = vmul.f32 %v161_v16, %v147_v19  ;;  %s714_s27 = sld [smem:[#allocation6 + $0x40]]  ;;  %s716_s28 = sld [smem:[#allocation6 + $0x9]] }
  0x41   :  { %v166_v30 = vmul.f32 %v165_v17, %v147_v19  ;;  %v173_v31 = vadd.f32 %v172_v21, %v170_v25  ;;  %v188_v36 = vstv %s646_s6  ;;  %v192_v37 = vstv %s648_s7  ;;  %s718_s0 = sld [smem:[#allocation6 + $0x13]]  ;;  %s725_s29 = sld [smem:[#allocation6 + $0x41]] }
  0x42   :  { %v151_v34 = vadd.f32 %v150_v26, %v124_v14  ;;  %v155_v38 = vadd.f32 %v154_v27, %v128_v18  ;;  %v196_v40 = vstv %s650_s8  ;;  %v199_v41 = vstv %s652_s9  ;;  %s729_s30 = sld [smem:[#allocation6 + $0x42]]  ;;  %s731_s3 = sld [smem:[#allocation6 + $0x43]] }
  0x43   :  { %v174_v39 = vmax.f32 %v173_v31, 0.0  ;;  %v159_v42 = vadd.f32 %v158_v28, %v132_v22  ;;  %v163_v43 = vadd.f32 %v162_v29, %v136_v23  ;;  %v167_v44 = vadd.f32 %v166_v30, %v140_v24  ;;  %s734_s4 = sld [smem:[#allocation6 + $0x44]]  ;;  %s736_s5 = sld [smem:[#allocation6 + $0x45]] }
  0x44   :  { %v197_v45 = vmul.f32 %v196_v40, %v551_v0  ;;  %v203_v52 = vstv %s659_s10  ;;  %v207_v53 = vstv %s663_s11  ;;  %v211_v55 = vstv %s665_s12  ;;  %s740_s6 = sld [smem:[#allocation6 + $0x46]]  ;;  %s742_s7 = sld [smem:[#allocation6 + $0x47]] }
  0x45   :  { %v177_v46 = vmul.f32 %v176_v32, %v174_v39  ;;  %v181_v47 = vmul.f32 %v180_v33, %v174_v39  ;;  %v185_v48 = vmul.f32 %v184_v35, %v174_v39  ;;  %v189_v49 = vmul.f32 %v188_v36, %v174_v39  ;;  %s747_s8 = sld [smem:[#allocation6 + $0x48]]  ;;  %s751_s9 = sld [smem:[#allocation6 + $0x49]] }
  0x46   :  { %v193_v50 = vmul.f32 %v192_v37, %v174_v39  ;;  %v200_v51 = vadd.f32 %v199_v41, %v197_v45  ;;  %v215_v56 = vstv %s668_s13  ;;  %v219_v57 = vstv %s670_s14  ;;  %s753_s10 = sld [smem:[#allocation6 + $0x4a]]  ;;  %s758_s11 = sld [smem:[#allocation6 + $0x4b]] }
  0x47   :  { %v178_v54 = vadd.f32 %v177_v46, %v151_v34  ;;  %v182_v58 = vadd.f32 %v181_v47, %v155_v38  ;;  %v223_v60 = vstv %s672_s15  ;;  %v226_v61 = vstv %s674_s16  ;;  %s763_s12 = sld [smem:[#allocation6 + $0x4c]]  ;;  %s765_s13 = sld [smem:[#allocation6 + $0x4d]] }
  0x48   :  { %v201_v59 = vmax.f32 %v200_v51, 0.0  ;;  %v186_v62 = vadd.f32 %v185_v48, %v159_v42  ;;  %v190_v63 = vadd.f32 %v189_v49, %v163_v43  ;;  %v194_v1 = vadd.f32 %v193_v50, %v167_v44  ;;  %s769_s14 = sld [smem:[#allocation6 + $0x4e]]  ;;  %s441_s15 = sld [smem:[#allocation6 + $0x4f]] }
  0x49   :  { %v224_v2 = vmul.f32 %v223_v60, %v551_v0  ;;  %v230_v9 = vstv %s681_s17  ;;  %v234_v10 = vstv %s685_s18  ;;  %v238_v12 = vstv %s687_s19  ;;  %s442_s16 = sld [smem:[#allocation6 + $0x50]]  ;;  %s510_s17 = smov [#allocation7]  }
  0x4a   :  { %v204_v3 = vmul.f32 %v203_v52, %v201_v59  ;;  %v208_v4 = vmul.f32 %v207_v53, %v201_v59  ;;  %v212_v5 = vmul.f32 %v211_v55, %v201_v59  ;;  %v216_v6 = vmul.f32 %v215_v56, %v201_v59  ;;  %s353_s18 = sshll.u32 %s510_s17, 4  ;;  %s354_s18 = int_to_ptr.vmem [resolvable:$true] %s353_s18 }
  0x4b   :  { %v220_v7 = vmul.f32 %v219_v57, %v201_v59  ;;  %v227_v8 = vadd.f32 %v226_v61, %v224_v2  ;;  %v242_v13 = vstv %s690_s20  ;;  %v246_v14 = vstv %s692_s21  ;;  %s480_s19 = scalar_lea.vmem %s354_s18, 128  ;;  %p485_p0 = scmp.lt.s32.totalorder %s354_s18, %s354_s18 }
  0x4c   :  { %v205_v11 = vadd.f32 %v204_v3, %v178_v54  ;;  %v209_v15 = vadd.f32 %v208_v4, %v182_v58  ;;  %v250_v17 = vstv %s694_s1  ;;  %v253_v18 = vstv %s696_s22  ;;  %p481_p13 = scmp.ne.s32.totalorder %s354_s18, %s480_s19  ;;  %p486_p1 = scmp.lt.s32.totalorder %s480_s19, %s480_s19 }
  0x4d   :  { %v228_v16 = vmax.f32 %v227_v8, 0.0  ;;  %v213_v19 = vadd.f32 %v212_v5, %v186_v62  ;;  %v217_v20 = vadd.f32 %v216_v6, %v190_v63  ;;  %v221_v21 = vadd.f32 %v220_v7, %v194_v1 }
  0x4e   :  { %v251_v22 = vmul.f32 %v250_v17, %v551_v0  ;;  %v257_v29 = vstv %s703_s23  ;;  %v261_v30 = vstv %s707_s24  ;;  %v265_v32 = vstv %s709_s25  ;;  %p487_p2 = por %p486_p1, %p485_p0 }
  0x4f   :  { %v231_v23 = vmul.f32 %v230_v9, %v228_v16  ;;  %v235_v24 = vmul.f32 %v234_v10, %v228_v16  ;;  %v239_v25 = vmul.f32 %v238_v12, %v228_v16  ;;  %v243_v26 = vmul.f32 %v242_v13, %v228_v16 }
  0x50   :  { %v247_v27 = vmul.f32 %v246_v14, %v228_v16  ;;  %v254_v28 = vadd.f32 %v253_v18, %v251_v22  ;;  %v269_v33 = vstv %s712_s26  ;;  %v273_v34 = vstv %s714_s27  ;;  %p488_p3 = pnand %p487_p2, %p481_p13 }
  0x51   :  { %v232_v31 = vadd.f32 %v231_v23, %v205_v11  ;;  %v236_v35 = vadd.f32 %v235_v24, %v209_v15  ;;  %v277_v37 = vstv %s716_s28  ;;  %v280_v38 = vstv %s718_s0 }
  0x52   :  { %v255_v36 = vmax.f32 %v254_v28, 0.0  ;;  %v240_v39 = vadd.f32 %v239_v25, %v213_v19  ;;  %v244_v40 = vadd.f32 %v243_v26, %v217_v20  ;;  %v248_v41 = vadd.f32 %v247_v27, %v221_v21 }
  0x53   :  { %v278_v42 = vmul.f32 %v277_v37, %v551_v0  ;;  %v284_v49 = vstv %s725_s29  ;;  %v288_v50 = vstv %s729_s30  ;;  %v292_v52 = vstv %s731_s3 }
  0x54   :  { %v258_v43 = vmul.f32 %v257_v29, %v255_v36  ;;  %v262_v44 = vmul.f32 %v261_v30, %v255_v36  ;;  %v266_v45 = vmul.f32 %v265_v32, %v255_v36  ;;  %v270_v46 = vmul.f32 %v269_v33, %v255_v36 }
  0x55   :  { %v274_v47 = vmul.f32 %v273_v34, %v255_v36  ;;  %v281_v48 = vadd.f32 %v280_v38, %v278_v42  ;;  %v296_v53 = vstv %s734_s4  ;;  %v300_v54 = vstv %s736_s5 }
  0x56   :  { %v259_v51 = vadd.f32 %v258_v43, %v232_v31  ;;  %v263_v0 = vadd.f32 %v262_v44, %v236_v35  ;;  %v267_v55 = vadd.f32 %v266_v45, %v240_v39  ;;  %v271_v56 = vadd.f32 %v270_v46, %v244_v40 }
  0x57   :  { %v282_v57 = vmax.f32 %v281_v48, 0.0  ;;  %v275_v58 = vadd.f32 %v274_v47, %v248_v41  ;;  %v304_v59 = vstv %s740_s6  ;;  %v311_v60 = vstv %s742_s7 }
  0x58   :  { %v319_v3 = vstv %s747_s8  ;;  %v327_v4 = vstv %s751_s9  ;;  %v335_v5 = vstv %s753_s10  ;;  %v308_v15 = vstv %s758_s11 }
  0x59   :  { %v285_v61 = vmul.f32 %v284_v49, %v282_v57  ;;  %v289_v62 = vmul.f32 %v288_v50, %v282_v57  ;;  %v293_v63 = vmul.f32 %v292_v52, %v282_v57  ;;  %v297_v1 = vmul.f32 %v296_v53, %v282_v57 }
  0x5a   :  { %v301_v2 = vmul.f32 %v300_v54, %v282_v57  ;;  %v315_v16 = vstv %s763_s12  ;;  %v323_v17 = vstv %s765_s13  ;;  %v331_v23 = vstv %s769_s14 }
  0x5b   :  { %v286_v6 = vadd.f32 %v285_v61, %v259_v51  ;;  %v290_v7 = vadd.f32 %v289_v62, %v263_v0  ;;  %v294_v8 = vadd.f32 %v293_v63, %v267_v55  ;;  %v298_v9 = vadd.f32 %v297_v1, %v271_v56 }
  0x5c   :  { %v302_v10 = vadd.f32 %v301_v2, %v275_v58  ;;  %v339_v28 = vstv %s441_s15  ;;  %v343_v34 = vstv %s442_s16 }
  0x5d   :  { %v305_v11 = vadd.f32 %v304_v59, %v286_v6  ;;  %v312_v12 = vadd.f32 %v311_v60, %v290_v7  ;;  %v320_v13 = vadd.f32 %v319_v3, %v294_v8  ;;  %v328_v14 = vadd.f32 %v327_v4, %v298_v9 }
  0x5e   :  { %v336_v18 = vadd.f32 %v335_v5, %v302_v10 }
  0x5f   :  { %v306_v19 = vmax.f32 %v305_v11, 0.0  ;;  %v313_v20 = vmax.f32 %v312_v12, 0.0  ;;  %v321_v21 = vmax.f32 %v320_v13, 0.0  ;;  %v329_v22 = vmax.f32 %v328_v14, 0.0 }
  0x60   :  { %v337_v27 = vmax.f32 %v336_v18, 0.0 }
  0x61   :  { %v309_v24 = vmul.f32 %v308_v15, %v306_v19  ;;  %v316_v25 = vmul.f32 %v315_v16, %v313_v20  ;;  %v324_v26 = vmul.f32 %v323_v17, %v321_v21  ;;  %v332_v30 = vmul.f32 %v331_v23, %v329_v22 }
  0x62   :  { %v340_v32 = vmul.f32 %v339_v28, %v337_v27 }
  0x63   :  { %v317_v29 = vadd.f32 %v316_v25, %v309_v24 }
  0x65   :  { %v325_v31 = vadd.f32 %v324_v26, %v317_v29 }
  0x67   :  { %v333_v33 = vadd.f32 %v332_v30, %v325_v31 }
  0x69   :  { %v341_v35 = vadd.f32 %v340_v32, %v333_v33 }
  0x6b   :  { %v344_v36 = vadd.f32 %v343_v34, %v341_v35 }
  0x6d   :  { %346 = vst.msk [vmem:[#allocation7] sm:$0xff] %vm345_vm0, %v344_v36 }
  0x6e   :  { %491 = shalt.err (!%p488_p3)
}
  0x6f   :  { %s492_s1 = scalar_lea.hbm %s792_s2, 128 }
  0x70   :  { %p493_p4 = scmp.ne.s32.totalorder %s792_s2, %s492_s1  ;;  %p496_p5 = scmp.lt.u32.totalorder %s492_s1, %s792_s2 }
  0x72   :  { %p498_p6 = pnand %p496_p5, %p493_p4 }
  0x74   :  { %501 = shalt.err (!%p498_p6)
}
  0x75   :  { %356 = dma.vmem_to_hbm [thread:$0]  %s354_s18, 128, %s792_s2, [#allocation4]  }
  0x76   :  { %506 = dma.done.wait [#allocation4], 128  }
  0x77   :  { %507 = vsyncadd [#allocation4], 4294967168 }
  0x78   :  { %360 = vsyncpa [#allocation3], 1 }
  0x79   :  { %361 = vsyncpa [#allocation4], 1 }
  0x7a   :  { %362 = vsyncpa [#allocation5], 1 }

</bundles_post_ra>
